<compile_context>
chip_gen: v7x
topology: tpu7x:2x2x1
jax: 0.10.0
libtpu: 0.0.40
codegen_flags: <defaults>
</compile_context>

<pallas_src>
import jax
import jax.numpy as jnp
from jax.experimental import pallas as pl
from jax.experimental.pallas import tpu as pltpu

LANE = 128      # vreg lane width / MXU-friendly feature padding
SUBLANE = 8     # f32 sublane count


def _round_up(n, m):
    return ((n + m - 1) // m) * m


def _cdiv(a, b):
    return -(-a // b)


# ---------------------------------------------------------------------------
# Kernel: fused 4-layer MLP forward on one (TB, Dp) batch tile.
# ---------------------------------------------------------------------------
def autoencoder_kernel(x_ref,
                       w1_ref, b1_ref,
                       w2_ref, b2_ref,
                       w3_ref, b3_ref,
                       w4_ref, b4_ref,
                       out_ref):
    """Matmul operands are bf16; every jnp.dot accumulates in f32; bias-add
    and ReLU stay in f32 (v5e-safe).  Weight/bias refs use constant
    index_maps, so they stay resident in VMEM across all grid iterations."""
    x = x_ref[...]                                                       # bf16 (TB, Dp)

    # ---- encoder ----
    h1 = jnp.dot(x, w1_ref[...], preferred_element_type=jnp.float32) + b1_ref[...]
    h1 = jnp.maximum(h1, 0.0)                                            # ReLU (f32)
    z = jnp.dot(h1.astype(w2_ref.dtype), w2_ref[...],
                preferred_element_type=jnp.float32) + b2_ref[...]

    # ---- decoder ----
    h2 = jnp.dot(z.astype(w3_ref.dtype), w3_ref[...],
                 preferred_element_type=jnp.float32) + b3_ref[...]
    h2 = jnp.maximum(h2, 0.0)                                            # ReLU (f32)
    y = jnp.dot(h2.astype(w4_ref.dtype), w4_ref[...],
                preferred_element_type=jnp.float32) + b4_ref[...]

    out_ref[...] = y.astype(out_ref.dtype)                               # bf16 store


# ---------------------------------------------------------------------------
# One-time parameter preparation (hoisted out of the forward path).
# ---------------------------------------------------------------------------
def prepare_params(params):
    """Pad all feature dims to multiples of 128 lanes and cast weights to
    bf16 ONCE.  Returns (padded_param_tuple, dims)."""
    (w1, b1), (w2, b2), (w3, b3), (w4, b4) = params
    input_dim, hidden_dim = w1.shape
    encoded_dim = w2.shape[1]

    dp = _round_up(input_dim, LANE)      # padded input/output feature dim
    hp = _round_up(hidden_dim, LANE)     # padded hidden dim
    ep = _round_up(encoded_dim, LANE)    # padded encoded dim
    # Note (v6e/v7x MXU fill): for real layer widths in the 128-255 range,
    # padding to 256 would fill the 2x256^2 MXU better; 128 is ideal on v5e.

    def pad2(a, rows, cols, dtype):
        out = jnp.zeros((rows, cols), dtype)
        return out.at[:a.shape[0], :a.shape[1]].set(a.astype(dtype))

    padded = (
        pad2(w1, dp, hp, jnp.bfloat16), pad2(b1, 1, hp, jnp.float32),
        pad2(w2, hp, ep, jnp.bfloat16), pad2(b2, 1, ep, jnp.float32),
        pad2(w3, ep, hp, jnp.bfloat16), pad2(b3, 1, hp, jnp.float32),
        pad2(w4, hp, dp, jnp.bfloat16), pad2(b4, 1, dp, jnp.float32),
    )
    dims = (input_dim, hidden_dim, encoded_dim, dp, hp, ep)
    return padded, dims


def _vmem_limit_bytes(tb, dp, hp, ep):
    """Explicit scoped-VMEM budget: resident bf16 weights (single-buffered),
    f32 biases, double-buffered bf16 x/out tiles, and f32 intermediates,
    with 2x headroom for compiler temporaries.  Clamped to [32, 64] MiB so it
    is valid on v7x (64 MiB physical) and well under v5e/v6e's 128 MiB."""
    bf16, f32 = 2, 4
    weights = (dp * hp + hp * ep + ep * hp + hp * dp) * bf16
    biases = (hp + ep + hp + dp) * f32
    x_bufs = 2 * tb * dp * bf16        # double-buffered input tiles
    o_bufs = 2 * tb * dp * bf16        # double-buffered bf16 output tiles
    interm = tb * (2 * hp + ep + dp) * f32
    need = weights + biases + x_bufs + o_bufs + interm
    return int(min(max(2 * need + (4 << 20), 32 << 20), 64 << 20))


def _build_pallas_call(tb, bp, dp, hp, ep, vmem_limit, single_buffer_weights):
    def resident(shape):
        # Same block every grid step -> DMA'd once, stays in VMEM.
        if single_buffer_weights:
            return pl.BlockSpec(shape, lambda i: (0, 0),
                                pipeline_mode=pl.Buffered(1))
        return pl.BlockSpec(shape, lambda i: (0, 0))

    return pl.pallas_call(
        autoencoder_kernel,
        out_shape=jax.ShapeDtypeStruct((bp, dp), jnp.bfloat16),
        grid=(bp // tb,),
        in_specs=[
            pl.BlockSpec((tb, dp), lambda i: (i, 0)),      # x: streamed over batch
            resident((dp, hp)), resident((1, hp)),         # encoder Linear 1
            resident((hp, ep)), resident((1, ep)),         # encoder Linear 2
            resident((ep, hp)), resident((1, hp)),         # decoder Linear 1
            resident((hp, dp)), resident((1, dp)),         # decoder Linear 2
        ],
        out_specs=pl.BlockSpec((tb, dp), lambda i: (i, 0)),  # lane-dense bf16 output
        compiler_params=pltpu.CompilerParams(
            dimension_semantics=("parallel",),             # megacore sharding (v7x)
            vmem_limit_bytes=vmem_limit,
        ),
    )


# ---------------------------------------------------------------------------
# Forward pass
# ---------------------------------------------------------------------------
def autoencoder_forward(x, prepared, *, block_batch=256):
    padded_params, dims = prepared
    input_dim, hidden_dim, encoded_dim, dp, hp, ep = dims
    batch = x.shape[0]
    assert x.shape[1] == input_dim

    # Batch tiling: aim for >= 2 tiles (keeps both v7x TensorCores busy) while
    # keeping the batch pad below one tile and tb a multiple of 8 sublanes.
    num_tiles = max(2, _cdiv(batch, block_batch))
    tb = max(_round_up(_cdiv(batch, num_tiles), SUBLANE), SUBLANE)
    bp = _round_up(batch, tb)

    vmem_limit = _vmem_limit_bytes(tb, dp, hp, ep)
    # TODO(synk): if the resident bf16 weights exceed ~half of vmem_limit
    # (very large hidden dims, esp. on v7x's 64 MiB VMEM), switch to a
    # hidden-dim-tiled variant with an f32 accumulator scratch instead of
    # keeping all four weight matrices resident.

    # Only the activations are padded per call; weights were prepared once.
    xp = jnp.zeros((bp, dp), jnp.bfloat16)
    xp = xp.at[:batch, :input_dim].set(x.astype(jnp.bfloat16))

    def run(single_buffer_weights):
        call = _build_pallas_call(tb, bp, dp, hp, ep, vmem_limit,
                                  single_buffer_weights)
        out = call(xp, *padded_params)
        jax.block_until_ready(out)
        return out

    try:
        out_padded = run(True)          # weights single-buffered (pl.Buffered(1))
    except Exception:
        out_padded = run(False)         # fallback: default double-buffered residents

    # Slice off padding; upcast to f32 to match the original module interface.
    return out_padded[:batch, :input_dim].astype(jnp.float32)


# ---------------------------------------------------------------------------
# Init + self-test
# ---------------------------------------------------------------------------
def init_linear(key, fan_in, fan_out):
    """Deterministic init mimicking torch.nn.Linear (uniform +-1/sqrt(fan_in)).
    Weight is returned already transposed to (fan_in, fan_out)."""
    kw, kb = jax.random.split(key)
    bound = 1.0 / jnp.sqrt(jnp.float32(fan_in))
    w = jax.random.uniform(kw, (fan_in, fan_out), jnp.float32, -bound, bound)
    b = jax.random.uniform(kb, (1, fan_out), jnp.float32, -bound, bound)
    return w, b


if __name__ == "__main__":
    input_dim, hidden_dim, encoded_dim = 32, 16, 8
    batch = 8

    key = jax.random.PRNGKey(0)
    k_x, k1, k2, k3, k4 = jax.random.split(key, 5)

    x = jax.random.normal(k_x, (batch, input_dim), jnp.float32)

    params = (
        init_linear(k1, input_dim, hidden_dim),    # encoder Linear 1
        init_linear(k2, hidden_dim, encoded_dim),  # encoder Linear 2
        init_linear(k3, encoded_dim, hidden_dim),  # decoder Linear 1
        init_linear(k4, hidden_dim, input_dim),    # decoder Linear 2
    )

    # One-time padding / bf16 cast of the weights (hoisted out of forward).
    prepared = prepare_params(params)

    out = autoencoder_forward(x, prepared)
    jax.block_until_ready(out)

    # Pure-JAX f32 reference (same math as the PyTorch module).  Tolerance is
    # loose because the kernel uses bf16 matmul operands / bf16 output
    # (f32 accumulation inside the dots).
    (w1, b1), (w2, b2), (w3, b3), (w4, b4) = params
    h1 = jnp.maximum(x @ w1 + b1, 0.0)
    z = h1 @ w2 + b2
    h2 = jnp.maximum(z @ w3 + b3, 0.0)
    ref = h2 @ w4 + b4

    assert out.shape == (batch, input_dim)
    assert jnp.allclose(out, ref, atol=5e-2, rtol=5e-2)

    print("KERNEL_OK")
</pallas_src>

<mosaic_0001>
module attributes {stable_mosaic.version = 11 : i64} {
  func.func @autoencoder_kernel(%arg0: i32, %arg1: memref<8x128xbf16, #tpu.memory_space<vmem>>, %arg2: memref<128x128xbf16, #tpu.memory_space<vmem>>, %arg3: memref<1x128xf32, #tpu.memory_space<vmem>>, %arg4: memref<128x128xbf16, #tpu.memory_space<vmem>>, %arg5: memref<1x128xf32, #tpu.memory_space<vmem>>, %arg6: memref<128x128xbf16, #tpu.memory_space<vmem>>, %arg7: memref<1x128xf32, #tpu.memory_space<vmem>>, %arg8: memref<128x128xbf16, #tpu.memory_space<vmem>>, %arg9: memref<1x128xf32, #tpu.memory_space<vmem>>, %arg10: memref<8x128xbf16, #tpu.memory_space<vmem>>) attributes {dimension_semantics = [#tpu.dimension_semantics<parallel>], iteration_bounds = array<i64: 1>, scalar_prefetch = 0 : i64, scratch_operands = 0 : i64, tpu.core_type = #tpu.core_type<tc>, window_params = [{transform_indices = @transform_0, window_bounds = array<i64: 8, 128>}, {pipeline_mode = #tpu.pipeline_mode<synchronous>, transform_indices = @transform_1, window_bounds = array<i64: 128, 128>}, {pipeline_mode = #tpu.pipeline_mode<synchronous>, transform_indices = @transform_2, window_bounds = array<i64: 1, 128>}, {pipeline_mode = #tpu.pipeline_mode<synchronous>, transform_indices = @transform_3, window_bounds = array<i64: 128, 128>}, {pipeline_mode = #tpu.pipeline_mode<synchronous>, transform_indices = @transform_4, window_bounds = array<i64: 1, 128>}, {pipeline_mode = #tpu.pipeline_mode<synchronous>, transform_indices = @transform_5, window_bounds = array<i64: 128, 128>}, {pipeline_mode = #tpu.pipeline_mode<synchronous>, transform_indices = @transform_6, window_bounds = array<i64: 1, 128>}, {pipeline_mode = #tpu.pipeline_mode<synchronous>, transform_indices = @transform_7, window_bounds = array<i64: 128, 128>}, {pipeline_mode = #tpu.pipeline_mode<synchronous>, transform_indices = @transform_8, window_bounds = array<i64: 1, 128>}, {transform_indices = @transform_9, window_bounds = array<i64: 8, 128>}]} {
    %c0 = arith.constant 0 : index
    %c0_0 = arith.constant 0 : index
    %0 = vector.load %arg1[%c0, %c0_0] : memref<8x128xbf16, #tpu.memory_space<vmem>>, vector<8x128xbf16>
    %c0_1 = arith.constant 0 : index
    %c0_2 = arith.constant 0 : index
    %1 = vector.load %arg2[%c0_1, %c0_2] : memref<128x128xbf16, #tpu.memory_space<vmem>>, vector<128x128xbf16>
    %cst = arith.constant dense<0.000000e+00> : vector<8x128xf32>
    %2 = tpu.matmul %0, %1, %cst {dimension_numbers = #tpu.dot_dimension_numbers<[1], [0], [0], [1], [0, 0, 1, 1], [], []>} : vector<8x128xbf16>, vector<128x128xbf16>, vector<8x128xf32> -> vector<8x128xf32>
    %c0_3 = arith.constant 0 : index
    %c0_4 = arith.constant 0 : index
    %3 = vector.load %arg3[%c0_3, %c0_4] : memref<1x128xf32, #tpu.memory_space<vmem>>, vector<1x128xf32>
    %4 = vector.broadcast %3 : vector<1x128xf32> to vector<8x128xf32>
    %5 = arith.addf %2, %4 : vector<8x128xf32>
    %cst_5 = arith.constant 0.000000e+00 : f32
    %6 = vector.broadcast %cst_5 : f32 to vector<8x128xf32>
    %7 = arith.maximumf %5, %6 : vector<8x128xf32>
    %8 = arith.truncf %7 : vector<8x128xf32> to vector<8x128xbf16>
    %c0_6 = arith.constant 0 : index
    %c0_7 = arith.constant 0 : index
    %9 = vector.load %arg4[%c0_6, %c0_7] : memref<128x128xbf16, #tpu.memory_space<vmem>>, vector<128x128xbf16>
    %cst_8 = arith.constant dense<0.000000e+00> : vector<8x128xf32>
    %10 = tpu.matmul %8, %9, %cst_8 {dimension_numbers = #tpu.dot_dimension_numbers<[1], [0], [0], [1], [0, 0, 1, 1], [], []>} : vector<8x128xbf16>, vector<128x128xbf16>, vector<8x128xf32> -> vector<8x128xf32>
    %c0_9 = arith.constant 0 : index
    %c0_10 = arith.constant 0 : index
    %11 = vector.load %arg5[%c0_9, %c0_10] : memref<1x128xf32, #tpu.memory_space<vmem>>, vector<1x128xf32>
    %12 = vector.broadcast %11 : vector<1x128xf32> to vector<8x128xf32>
    %13 = arith.addf %10, %12 : vector<8x128xf32>
    %14 = arith.truncf %13 : vector<8x128xf32> to vector<8x128xbf16>
    %c0_11 = arith.constant 0 : index
    %c0_12 = arith.constant 0 : index
    %15 = vector.load %arg6[%c0_11, %c0_12] : memref<128x128xbf16, #tpu.memory_space<vmem>>, vector<128x128xbf16>
    %cst_13 = arith.constant dense<0.000000e+00> : vector<8x128xf32>
    %16 = tpu.matmul %14, %15, %cst_13 {dimension_numbers = #tpu.dot_dimension_numbers<[1], [0], [0], [1], [0, 0, 1, 1], [], []>} : vector<8x128xbf16>, vector<128x128xbf16>, vector<8x128xf32> -> vector<8x128xf32>
    %c0_14 = arith.constant 0 : index
    %c0_15 = arith.constant 0 : index
    %17 = vector.load %arg7[%c0_14, %c0_15] : memref<1x128xf32, #tpu.memory_space<vmem>>, vector<1x128xf32>
    %18 = vector.broadcast %17 : vector<1x128xf32> to vector<8x128xf32>
    %19 = arith.addf %16, %18 : vector<8x128xf32>
    %cst_16 = arith.constant 0.000000e+00 : f32
    %20 = vector.broadcast %cst_16 : f32 to vector<8x128xf32>
    %21 = arith.maximumf %19, %20 : vector<8x128xf32>
    %22 = arith.truncf %21 : vector<8x128xf32> to vector<8x128xbf16>
    %c0_17 = arith.constant 0 : index
    %c0_18 = arith.constant 0 : index
    %23 = vector.load %arg8[%c0_17, %c0_18] : memref<128x128xbf16, #tpu.memory_space<vmem>>, vector<128x128xbf16>
    %cst_19 = arith.constant dense<0.000000e+00> : vector<8x128xf32>
    %24 = tpu.matmul %22, %23, %cst_19 {dimension_numbers = #tpu.dot_dimension_numbers<[1], [0], [0], [1], [0, 0, 1, 1], [], []>} : vector<8x128xbf16>, vector<128x128xbf16>, vector<8x128xf32> -> vector<8x128xf32>
    %c0_20 = arith.constant 0 : index
    %c0_21 = arith.constant 0 : index
    %25 = vector.load %arg9[%c0_20, %c0_21] : memref<1x128xf32, #tpu.memory_space<vmem>>, vector<1x128xf32>
    %26 = vector.broadcast %25 : vector<1x128xf32> to vector<8x128xf32>
    %27 = arith.addf %24, %26 : vector<8x128xf32>
    %28 = arith.truncf %27 : vector<8x128xf32> to vector<8x128xbf16>
    %c0_22 = arith.constant 0 : index
    %c0_23 = arith.constant 0 : index
    %29 = vector.load %arg10[%c0_22, %c0_23] : memref<8x128xbf16, #tpu.memory_space<vmem>>, vector<8x128xbf16>
    tpu.vector_store %arg10[%c0_22, %c0_23], %28 {strides = array<i32>} : memref<8x128xbf16, #tpu.memory_space<vmem>>, vector<8x128xbf16>,
    return
  }
  func.func @transform_0(%arg0: i32) -> (i32, i32) {
    %c0_i32 = arith.constant 0 : i32
    %c0_i32_0 = arith.constant 0 : i32
    return %arg0, %c0_i32 : i32, i32
  }
  func.func @transform_1(%arg0: i32) -> (i32, i32) {
    %c0_i32 = arith.constant 0 : i32
    %c0_i32_0 = arith.constant 0 : i32
    %c0_i32_1 = arith.constant 0 : i32
    return %c0_i32, %c0_i32_0 : i32, i32
  }
  func.func @transform_2(%arg0: i32) -> (i32, i32) {
    %c0_i32 = arith.constant 0 : i32
    %c0_i32_0 = arith.constant 0 : i32
    %c0_i32_1 = arith.constant 0 : i32
    return %c0_i32, %c0_i32_0 : i32, i32
  }
  func.func @transform_3(%arg0: i32) -> (i32, i32) {
    %c0_i32 = arith.constant 0 : i32
    %c0_i32_0 = arith.constant 0 : i32
    %c0_i32_1 = arith.constant 0 : i32
    return %c0_i32, %c0_i32_0 : i32, i32
  }
  func.func @transform_4(%arg0: i32) -> (i32, i32) {
    %c0_i32 = arith.constant 0 : i32
    %c0_i32_0 = arith.constant 0 : i32
    %c0_i32_1 = arith.constant 0 : i32
    return %c0_i32, %c0_i32_0 : i32, i32
  }
  func.func @transform_5(%arg0: i32) -> (i32, i32) {
    %c0_i32 = arith.constant 0 : i32
    %c0_i32_0 = arith.constant 0 : i32
    %c0_i32_1 = arith.constant 0 : i32
    return %c0_i32, %c0_i32_0 : i32, i32
  }
  func.func @transform_6(%arg0: i32) -> (i32, i32) {
    %c0_i32 = arith.constant 0 : i32
    %c0_i32_0 = arith.constant 0 : i32
    %c0_i32_1 = arith.constant 0 : i32
    return %c0_i32, %c0_i32_0 : i32, i32
  }
  func.func @transform_7(%arg0: i32) -> (i32, i32) {
    %c0_i32 = arith.constant 0 : i32
    %c0_i32_0 = arith.constant 0 : i32
    %c0_i32_1 = arith.constant 0 : i32
    return %c0_i32, %c0_i32_0 : i32, i32
  }
  func.func @transform_8(%arg0: i32) -> (i32, i32) {
    %c0_i32 = arith.constant 0 : i32
    %c0_i32_0 = arith.constant 0 : i32
    %c0_i32_1 = arith.constant 0 : i32
    return %c0_i32, %c0_i32_0 : i32, i32
  }
  func.func @transform_9(%arg0: i32) -> (i32, i32) {
    %c0_i32 = arith.constant 0 : i32
    %c0_i32_0 = arith.constant 0 : i32
    return %arg0, %c0_i32 : i32, i32
  }
}

module attributes {stable_mosaic.version = 11 : i64} {
  func.func @autoencoder_kernel(%arg0: i32, %arg1: memref<8x128xbf16, #tpu.memory_space<vmem>>, %arg2: memref<128x128xbf16, #tpu.memory_space<vmem>>, %arg3: memref<1x128xf32, #tpu.memory_space<vmem>>, %arg4: memref<128x128xbf16, #tpu.memory_space<vmem>>, %arg5: memref<1x128xf32, #tpu.memory_space<vmem>>, %arg6: memref<128x128xbf16, #tpu.memory_space<vmem>>, %arg7: memref<1x128xf32, #tpu.memory_space<vmem>>, %arg8: memref<128x128xbf16, #tpu.memory_space<vmem>>, %arg9: memref<1x128xf32, #tpu.memory_space<vmem>>, %arg10: memref<8x128xbf16, #tpu.memory_space<vmem>>) attributes {dimension_semantics = [#tpu.dimension_semantics<parallel>], iteration_bounds = array<i64: 1>, scalar_prefetch = 0 : i64, scratch_operands = 0 : i64, tpu.core_type = #tpu.core_type<tc>, window_params = [{transform_indices = @transform_0, window_bounds = array<i64: 8, 128>}, {pipeline_mode = #tpu.pipeline_mode<synchronous>, transform_indices = @transform_1, window_bounds = array<i64: 128, 128>}, {pipeline_mode = #tpu.pipeline_mode<synchronous>, transform_indices = @transform_2, window_bounds = array<i64: 1, 128>}, {pipeline_mode = #tpu.pipeline_mode<synchronous>, transform_indices = @transform_3, window_bounds = array<i64: 128, 128>}, {pipeline_mode = #tpu.pipeline_mode<synchronous>, transform_indices = @transform_4, window_bounds = array<i64: 1, 128>}, {pipeline_mode = #tpu.pipeline_mode<synchronous>, transform_indices = @transform_5, window_bounds = array<i64: 128, 128>}, {pipeline_mode = #tpu.pipeline_mode<synchronous>, transform_indices = @transform_6, window_bounds = array<i64: 1, 128>}, {pipeline_mode = #tpu.pipeline_mode<synchronous>, transform_indices = @transform_7, window_bounds = array<i64: 128, 128>}, {pipeline_mode = #tpu.pipeline_mode<synchronous>, transform_indices = @transform_8, window_bounds = array<i64: 1, 128>}, {transform_indices = @transform_9, window_bounds = array<i64: 8, 128>}]} {
    %c0 = arith.constant 0 : index
    %c0_0 = arith.constant 0 : index
    %0 = vector.load %arg1[%c0, %c0_0] : memref<8x128xbf16, #tpu.memory_space<vmem>>, vector<8x128xbf16>
    %c0_1 = arith.constant 0 : index
    %c0_2 = arith.constant 0 : index
    %1 = vector.load %arg2[%c0_1, %c0_2] : memref<128x128xbf16, #tpu.memory_space<vmem>>, vector<128x128xbf16>
    %cst = arith.constant dense<0.000000e+00> : vector<8x128xf32>
    %2 = tpu.matmul %0, %1, %cst {dimension_numbers = #tpu.dot_dimension_numbers<[1], [0], [0], [1], [0, 0, 1, 1], [], []>} : vector<8x128xbf16>, vector<128x128xbf16>, vector<8x128xf32> -> vector<8x128xf32>
    %c0_3 = arith.constant 0 : index
    %c0_4 = arith.constant 0 : index
    %3 = vector.load %arg3[%c0_3, %c0_4] : memref<1x128xf32, #tpu.memory_space<vmem>>, vector<1x128xf32>
    %4 = vector.broadcast %3 : vector<1x128xf32> to vector<8x128xf32>
    %5 = arith.addf %2, %4 : vector<8x128xf32>
    %cst_5 = arith.constant 0.000000e+00 : f32
    %6 = vector.broadcast %cst_5 : f32 to vector<8x128xf32>
    %7 = arith.maximumf %5, %6 : vector<8x128xf32>
    %8 = arith.truncf %7 : vector<8x128xf32> to vector<8x128xbf16>
    %c0_6 = arith.constant 0 : index
    %c0_7 = arith.constant 0 : index
    %9 = vector.load %arg4[%c0_6, %c0_7] : memref<128x128xbf16, #tpu.memory_space<vmem>>, vector<128x128xbf16>
    %cst_8 = arith.constant dense<0.000000e+00> : vector<8x128xf32>
    %10 = tpu.matmul %8, %9, %cst_8 {dimension_numbers = #tpu.dot_dimension_numbers<[1], [0], [0], [1], [0, 0, 1, 1], [], []>} : vector<8x128xbf16>, vector<128x128xbf16>, vector<8x128xf32> -> vector<8x128xf32>
    %c0_9 = arith.constant 0 : index
    %c0_10 = arith.constant 0 : index
    %11 = vector.load %arg5[%c0_9, %c0_10] : memref<1x128xf32, #tpu.memory_space<vmem>>, vector<1x128xf32>
    %12 = vector.broadcast %11 : vector<1x128xf32> to vector<8x128xf32>
    %13 = arith.addf %10, %12 : vector<8x128xf32>
    %14 = arith.truncf %13 : vector<8x128xf32> to vector<8x128xbf16>
    %c0_11 = arith.constant 0 : index
    %c0_12 = arith.constant 0 : index
    %15 = vector.load %arg6[%c0_11, %c0_12] : memref<128x128xbf16, #tpu.memory_space<vmem>>, vector<128x128xbf16>
    %cst_13 = arith.constant dense<0.000000e+00> : vector<8x128xf32>
    %16 = tpu.matmul %14, %15, %cst_13 {dimension_numbers = #tpu.dot_dimension_numbers<[1], [0], [0], [1], [0, 0, 1, 1], [], []>} : vector<8x128xbf16>, vector<128x128xbf16>, vector<8x128xf32> -> vector<8x128xf32>
    %c0_14 = arith.constant 0 : index
    %c0_15 = arith.constant 0 : index
    %17 = vector.load %arg7[%c0_14, %c0_15] : memref<1x128xf32, #tpu.memory_space<vmem>>, vector<1x128xf32>
    %18 = vector.broadcast %17 : vector<1x128xf32> to vector<8x128xf32>
    %19 = arith.addf %16, %18 : vector<8x128xf32>
    %cst_16 = arith.constant 0.000000e+00 : f32
    %20 = vector.broadcast %cst_16 : f32 to vector<8x128xf32>
    %21 = arith.maximumf %19, %20 : vector<8x128xf32>
    %22 = arith.truncf %21 : vector<8x128xf32> to vector<8x128xbf16>
    %c0_17 = arith.constant 0 : index
    %c0_18 = arith.constant 0 : index
    %23 = vector.load %arg8[%c0_17, %c0_18] : memref<128x128xbf16, #tpu.memory_space<vmem>>, vector<128x128xbf16>
    %cst_19 = arith.constant dense<0.000000e+00> : vector<8x128xf32>
    %24 = tpu.matmul %22, %23, %cst_19 {dimension_numbers = #tpu.dot_dimension_numbers<[1], [0], [0], [1], [0, 0, 1, 1], [], []>} : vector<8x128xbf16>, vector<128x128xbf16>, vector<8x128xf32> -> vector<8x128xf32>
    %c0_20 = arith.constant 0 : index
    %c0_21 = arith.constant 0 : index
    %25 = vector.load %arg9[%c0_20, %c0_21] : memref<1x128xf32, #tpu.memory_space<vmem>>, vector<1x128xf32>
    %26 = vector.broadcast %25 : vector<1x128xf32> to vector<8x128xf32>
    %27 = arith.addf %24, %26 : vector<8x128xf32>
    %28 = arith.truncf %27 : vector<8x128xf32> to vector<8x128xbf16>
    %c0_22 = arith.constant 0 : index
    %c0_23 = arith.constant 0 : index
    %29 = vector.load %arg10[%c0_22, %c0_23] : memref<8x128xbf16, #tpu.memory_space<vmem>>, vector<8x128xbf16>
    tpu.vector_store %arg10[%c0_22, %c0_23], %28 {strides = array<i32>} : memref<8x128xbf16, #tpu.memory_space<vmem>>, vector<8x128xbf16>,
    return
  }
  func.func @transform_0(%arg0: i32) -> (i32, i32) {
    %c0_i32 = arith.constant 0 : i32
    %c0_i32_0 = arith.constant 0 : i32
    return %arg0, %c0_i32 : i32, i32
  }
  func.func @transform_1(%arg0: i32) -> (i32, i32) {
    %c0_i32 = arith.constant 0 : i32
    %c0_i32_0 = arith.constant 0 : i32
    %c0_i32_1 = arith.constant 0 : i32
    return %c0_i32, %c0_i32_0 : i32, i32
  }
  func.func @transform_2(%arg0: i32) -> (i32, i32) {
    %c0_i32 = arith.constant 0 : i32
    %c0_i32_0 = arith.constant 0 : i32
    %c0_i32_1 = arith.constant 0 : i32
    return %c0_i32, %c0_i32_0 : i32, i32
  }
  func.func @transform_3(%arg0: i32) -> (i32, i32) {
    %c0_i32 = arith.constant 0 : i32
    %c0_i32_0 = arith.constant 0 : i32
    %c0_i32_1 = arith.constant 0 : i32
    return %c0_i32, %c0_i32_0 : i32, i32
  }
  func.func @transform_4(%arg0: i32) -> (i32, i32) {
    %c0_i32 = arith.constant 0 : i32
    %c0_i32_0 = arith.constant 0 : i32
    %c0_i32_1 = arith.constant 0 : i32
    return %c0_i32, %c0_i32_0 : i32, i32
  }
  func.func @transform_5(%arg0: i32) -> (i32, i32) {
    %c0_i32 = arith.constant 0 : i32
    %c0_i32_0 = arith.constant 0 : i32
    %c0_i32_1 = arith.constant 0 : i32
    return %c0_i32, %c0_i32_0 : i32, i32
  }
  func.func @transform_6(%arg0: i32) -> (i32, i32) {
    %c0_i32 = arith.constant 0 : i32
    %c0_i32_0 = arith.constant 0 : i32
    %c0_i32_1 = arith.constant 0 : i32
    return %c0_i32, %c0_i32_0 : i32, i32
  }
  func.func @transform_7(%arg0: i32) -> (i32, i32) {
    %c0_i32 = arith.constant 0 : i32
    %c0_i32_0 = arith.constant 0 : i32
    %c0_i32_1 = arith.constant 0 : i32
    return %c0_i32, %c0_i32_0 : i32, i32
  }
  func.func @transform_8(%arg0: i32) -> (i32, i32) {
    %c0_i32 = arith.constant 0 : i32
    %c0_i32_0 = arith.constant 0 : i32
    %c0_i32_1 = arith.constant 0 : i32
    return %c0_i32, %c0_i32_0 : i32, i32
  }
  func.func @transform_9(%arg0: i32) -> (i32, i32) {
    %c0_i32 = arith.constant 0 : i32
    %c0_i32_0 = arith.constant 0 : i32
    return %arg0, %c0_i32 : i32, i32
  }
}

</mosaic_0001>

<bundles_post_ra>
// kernel: tpu_custom_call.1
= control target key start
LH: loop header
LB: loop body
LE: loop exit
PB: predicated region body
PF: predicated region fallthrough
CT: control target
= control target key end

     0   :  { %14 = vsyncpa [#allocation3], 0  ;;  %s1099_s0 = inlined_call_operand.hbm [shape: bf16[8,128], index: 0, kind: input, shape index: {}]   ;;  %s1100_s1 = inlined_call_operand.hbm [shape: bf16[128,128], index: 1, kind: input, shape index: {}]   ;;  %s1101_s2 = inlined_call_operand.vmem [shape: f32[1,128], index: 2, kind: input, shape index: {}]   ;;  %s1102_s3 = inlined_call_operand.hbm [shape: bf16[128,128], index: 3, kind: input, shape index: {}]   ;;  %s1103_s4 = inlined_call_operand.vmem [shape: f32[1,128], index: 4, kind: input, shape index: {}]   ;;  %s1104_s5 = inlined_call_operand.hbm [shape: bf16[128,128], index: 5, kind: input, shape index: {}]   ;;  %s1105_s6 = inlined_call_operand.vmem [shape: f32[1,128], index: 6, kind: input, shape index: {}]   ;;  %s1106_s7 = inlined_call_operand.hbm [shape: bf16[128,128], index: 7, kind: input, shape index: {}]   ;;  %s1107_s8 = inlined_call_operand.vmem [shape: f32[1,128], index: 8, kind: input, shape index: {}]   ;;  %s1108_s9 = inlined_call_operand.hbm [shape: bf16[8,128], index: 9, kind: output, shape index: {}]  }
   0x1   :  { %15 = vsyncpa [#allocation6], 0 }
   0x2   :  { %16 = vsyncpa [#allocation9], 0 }
   0x3   :  { %17 = vsyncpa [#allocation4], 0  ;;  %s903_s30 = smov [#allocation5]   ;;  %s763_s13 = scalar_lea.hbm %s1100_s1, 1024 }
   0x4   :  { %s33_s10 = sshll.u32 %s903_s30, 4  ;;  %p764_p0 = scmp.ne.s32.totalorder %s1100_s1, %s763_s13  ;;  %s34_s10 = int_to_ptr.vmem [resolvable:$true] %s33_s10 }
   0x5   :  { %p767_p1 = scmp.lt.u32.totalorder %s763_s13, %s1100_s1 }
   0x7   :  { %p769_p2 = pnand %p767_p1, %p764_p0 }
   0x9   :  { %772 = shalt.err (!%p769_p2)
}
   0xa   :  { %s773_s18 = scalar_lea.vmem %s34_s10, 1024  ;;  %p778_p4 = scmp.lt.s32.totalorder %s34_s10, %s34_s10 }
   0xb   :  { %p774_p3 = scmp.ne.s32.totalorder %s34_s10, %s773_s18  ;;  %p779_p5 = scmp.lt.s32.totalorder %s773_s18, %s773_s18 }
   0xd   :  { %p780_p6 = por %p779_p5, %p778_p4 }
   0xf   :  { %p781_p7 = pnand %p780_p6, %p774_p3 }
  0x11   :  { %784 = shalt.err (!%p781_p7)
}
  0x12   :  { %s904_s19 = smov 64   ;;  %s905_s20 = smov 4  }
  0x13   :  { %39 = dma.hbm_to_vmem [thread:$0]  %s1100_s1, 1024, %s34_s10, [#allocation6], %s904_s19, %s904_s19, %s905_s20  }
  0x14   :  { %s906_s23 = smov [#allocation8]   ;;  %s907_s25 = smov [#allocation2]  }
  0x15   :  { %s61_s24 = sshll.u32 %s906_s23, 4  ;;  %s24_s26 = sshll.u32 %s907_s25, 4  ;;  %s62_s24 = int_to_ptr.vmem [resolvable:$true] %s61_s24  ;;  %s25_s26 = int_to_ptr.vmem [resolvable:$true] %s24_s26 }
  0x16   :  { %s785_s29 = scalar_lea.hbm %s1104_s5, 1024 }
  0x17   :  { %p786_p8 = scmp.ne.s32.totalorder %s1104_s5, %s785_s29  ;;  %p789_p9 = scmp.lt.u32.totalorder %s785_s29, %s1104_s5 }
  0x19   :  { %p791_p10 = pnand %p789_p9, %p786_p8 }
  0x1b   :  { %794 = shalt.err (!%p791_p10)
}
  0x1c   :  { %s795_s1 = scalar_lea.vmem %s62_s24, 1024  ;;  %p800_p12 = scmp.lt.s32.totalorder %s62_s24, %s62_s24 }
  0x1d   :  { %p796_p11 = scmp.ne.s32.totalorder %s62_s24, %s795_s1  ;;  %p801_p13 = scmp.lt.s32.totalorder %s795_s1, %s795_s1 }
  0x1f   :  { %p802_p0 = por %p801_p13, %p800_p12 }
  0x21   :  { %p803_p1 = pnand %p802_p0, %p796_p11 }
  0x23   :  { %806 = shalt.err (!%p803_p1)
}
  0x24   :  { %67 = dma.hbm_to_vmem [thread:$0]  %s1104_s5, 1024, %s62_s24, [#allocation9], %s904_s19, %s904_s19, %s905_s20  }
  0x25   :  { %s807_s17 = scalar_lea.hbm %s1099_s0, 64 }
  0x26   :  { %p808_p2 = scmp.ne.s32.totalorder %s1099_s0, %s807_s17  ;;  %p811_p3 = scmp.lt.u32.totalorder %s807_s17, %s1099_s0 }
  0x28   :  { %p813_p4 = pnand %p811_p3, %p808_p2 }
  0x2a   :  { %816 = shalt.err (!%p813_p4)
}
  0x2b   :  { %s817_s25 = scalar_lea.vmem %s25_s26, 64  ;;  %p822_p6 = scmp.lt.s32.totalorder %s25_s26, %s25_s26 }
  0x2c   :  { %p818_p5 = scmp.ne.s32.totalorder %s25_s26, %s817_s25  ;;  %p823_p7 = scmp.lt.s32.totalorder %s817_s25, %s817_s25 }
  0x2e   :  { %p824_p8 = por %p823_p7, %p822_p6 }
  0x30   :  { %p825_p9 = pnand %p824_p8, %p818_p5 }
  0x32   :  { %828 = shalt.err (!%p825_p9)
}
  0x33   :  { %27 = dma.hbm_to_vmem [thread:$0]  %s1099_s0, 64, %s25_s26, [#allocation3]  }
  0x34   :  { %s908_s27 = smov [#allocation7]   ;;  %s909_s29 = smov [#allocation10]  }
  0x35   :  { %s47_s28 = sshll.u32 %s908_s27, 4  ;;  %s75_s30 = sshll.u32 %s909_s29, 4  ;;  %s48_s28 = int_to_ptr.vmem [resolvable:$true] %s47_s28  ;;  %s76_s30 = int_to_ptr.vmem [resolvable:$true] %s75_s30 }
  0x36   :  { %s829_s13 = scalar_lea.hbm %s1102_s3, 1024 }
  0x37   :  { %p830_p10 = scmp.ne.s32.totalorder %s1102_s3, %s829_s13  ;;  %p833_p11 = scmp.lt.u32.totalorder %s829_s13, %s1102_s3 }
  0x39   :  { %p835_p12 = pnand %p833_p11, %p830_p10 }
  0x3b   :  { %838 = shalt.err (!%p835_p12)
}
  0x3c   :  { %s839_s0 = scalar_lea.vmem %s48_s28, 1024  ;;  %p844_p0 = scmp.lt.s32.totalorder %s48_s28, %s48_s28 }
  0x3d   :  { %p840_p13 = scmp.ne.s32.totalorder %s48_s28, %s839_s0  ;;  %p845_p1 = scmp.lt.s32.totalorder %s839_s0, %s839_s0 }
  0x3f   :  { %p846_p2 = por %p845_p1, %p844_p0 }
  0x41   :  { %p847_p3 = pnand %p846_p2, %p840_p13 }
  0x43   :  { %850 = shalt.err (!%p847_p3)
}
  0x44   :  { %53 = dma.hbm_to_vmem [thread:$0]  %s1102_s3, 1024, %s48_s28, [#allocation6], %s904_s19, %s904_s19, %s905_s20  }
  0x45   :  { %s851_s21 = scalar_lea.hbm %s1106_s7, 1024 }
  0x46   :  { %p852_p4 = scmp.ne.s32.totalorder %s1106_s7, %s851_s21  ;;  %p855_p5 = scmp.lt.u32.totalorder %s851_s21, %s1106_s7 }
  0x48   :  { %p857_p6 = pnand %p855_p5, %p852_p4 }
  0x4a   :  { %860 = shalt.err (!%p857_p6)
}
  0x4b   :  { %s861_s24 = scalar_lea.vmem %s76_s30, 1024  ;;  %p866_p8 = scmp.lt.s32.totalorder %s76_s30, %s76_s30 }
  0x4c   :  { %p862_p7 = scmp.ne.s32.totalorder %s76_s30, %s861_s24  ;;  %p867_p9 = scmp.lt.s32.totalorder %s861_s24, %s861_s24 }
  0x4e   :  { %p868_p10 = por %p867_p9, %p866_p8 }
  0x50   :  { %p869_p11 = pnand %p868_p10, %p862_p7 }
  0x52   :  { %872 = shalt.err (!%p869_p11)
}
  0x53   :  { %81 = dma.hbm_to_vmem [thread:$0]  %s1106_s7, 1024, %s76_s30, [#allocation9], %s904_s19, %s904_s19, %s905_s20  }
  0x54   :  { %895 = dma.done.wait [#allocation3], 64  }
  0x55   :  { %896 = vsyncadd [#allocation3], 4294967232 }
  0x56   :  { %897 = dma.done.wait [#allocation6], 2048  }
  0x57   :  { %898 = vsyncadd [#allocation6], 4294965248 }
  0x58   :  { %899 = dma.done.wait [#allocation9], 2048  }
  0x59   :  { %900 = vsyncadd [#allocation9], 4294965248  ;;  %v910_v0 = vmov 0.0   ;;  %vm911_vm0 = vmmov 0   ;;  %v731_v1 = vld [vmem:[#allocation5] sm:$0xff]   ;;  %v732_v2 = vld [vmem:[#allocation5 + $0x8] sm:$0xff]  }
  0x5a   :  { %641 = vmatprep.subr.bf16.mxu0 %v910_v0  ;;  %657 = vmatprep.mubr.msk.bf16.mxu0 %vm911_vm0, %v910_v0  ;;  %v733_v3 = vld [vmem:[#allocation5 + $0x10] sm:$0xff]   ;;  %v739_v4 = vld [vmem:[#allocation7] sm:$0xff]   ;;  %v734_v5 = vld [vmem:[#allocation5 + $0x18] sm:$0xff]   ;;  %s912_s11 = smov [#allocation11]  }
  0x5b   :  { %661 = vmatprep.subr.bf16.mxu1 %v910_v0  ;;  %677 = vmatprep.mubr.msk.bf16.mxu1 %vm911_vm0, %v910_v0  ;;  %v740_v6 = vld [vmem:[#allocation7 + $0x8] sm:$0xff]   ;;  %v735_v7 = vld [vmem:[#allocation5 + $0x20] sm:$0xff]   ;;  %v741_v8 = vld [vmem:[#allocation7 + $0x10] sm:$0xff]   ;;  %s558_s12 = sshll.u32 %s912_s11, 4  ;;  %s559_s12 = int_to_ptr.vmem [resolvable:$true] %s558_s12 }
  0x5c   :  { %642 = vmatpush3.bf16.msra.mxu0 %v731_v1  ;;  %662 = vmatpush3.bf16.msra.mxu1 %v739_v4  ;;  %v736_v9 = vld [vmem:[#allocation5 + $0x28] sm:$0xff]   ;;  %v742_v10 = vld [vmem:[#allocation7 + $0x18] sm:$0xff]   ;;  %v737_v11 = vld [vmem:[#allocation5 + $0x30] sm:$0xff]   ;;  %p878_p13 = scmp.lt.s32.totalorder %s559_s12, %s559_s12 }
  0x5d   :  { %643 = vmatprep.subr.bf16.mxu0 %v910_v0  ;;  %663 = vmatprep.subr.bf16.mxu1 %v910_v0  ;;  %v743_v12 = vld [vmem:[#allocation7 + $0x20] sm:$0xff]   ;;  %v738_v13 = vld [vmem:[#allocation5 + $0x38] sm:$0xff]   ;;  %v744_v14 = vld [vmem:[#allocation7 + $0x28] sm:$0xff]  }
  0x5e   :  { %v100_v15 = vld [vmem:[#allocation2] sm:$0xf]  ;;  %v745_v16 = vld [vmem:[#allocation7 + $0x30] sm:$0xff]   ;;  %v747_v18 = vld [vmem:[#allocation8] sm:$0xff]  }
  0x5f   :  { %v746_v17 = vld [vmem:[#allocation7 + $0x38] sm:$0xff]   ;;  %v748_v19 = vld [vmem:[#allocation8 + $0x8] sm:$0xff]   ;;  %v749_v20 = vld [vmem:[#allocation8 + $0x10] sm:$0xff]  }
  0x60   :  { %644 = vmatpush3.bf16.msra.mxu0 %v732_v2  ;;  %664 = vmatpush3.bf16.msra.mxu1 %v740_v6  ;;  %v750_v21 = vld [vmem:[#allocation8 + $0x18] sm:$0xff]   ;;  %v751_v22 = vld [vmem:[#allocation8 + $0x20] sm:$0xff]   ;;  %v752_v23 = vld [vmem:[#allocation8 + $0x28] sm:$0xff]  }
  0x61   :  { %645 = vmatprep.subr.bf16.mxu0 %v910_v0  ;;  %665 = vmatprep.subr.bf16.mxu1 %v910_v0  ;;  %v753_v24 = vld [vmem:[#allocation8 + $0x30] sm:$0xff]   ;;  %v569_v25 = vld [vmem:[%s1101_s2] ss:$0 sm:$0xff]  ;;  %v755_v34 = vld [vmem:[#allocation10] sm:$0xff]  }
  0x62   :  { %v754_v33 = vld [vmem:[#allocation8 + $0x38] sm:$0xff]   ;;  %v756_v35 = vld [vmem:[#allocation10 + $0x8] sm:$0xff]   ;;  %v757_v36 = vld [vmem:[#allocation10 + $0x10] sm:$0xff]  }
  0x63   :  { %v758_v37 = vld [vmem:[#allocation10 + $0x18] sm:$0xff]   ;;  %v759_v38 = vld [vmem:[#allocation10 + $0x20] sm:$0xff]   ;;  %v760_v39 = vld [vmem:[#allocation10 + $0x28] sm:$0xff]  }
  0x64   :  { %646 = vmatpush3.bf16.msra.mxu0 %v733_v3  ;;  %666 = vmatpush3.bf16.msra.mxu1 %v741_v8  ;;  %v578_v40 = vld [vmem:[%s1103_s4] ss:$0 sm:$0xff]  ;;  %v761_v47 = vld [vmem:[#allocation10 + $0x30] sm:$0xff]  }
  0x65   :  { %647 = vmatprep.subr.bf16.mxu0 %v910_v0  ;;  %667 = vmatprep.subr.bf16.mxu1 %v910_v0  ;;  %v762_v48 = vld [vmem:[#allocation10 + $0x38] sm:$0xff]  }
  0x66   :  { %v587_v49 = vld [vmem:[%s1105_s6] ss:$0 sm:$0xff]  ;;  %s873_s6 = scalar_lea.vmem %s559_s12, 64 }
  0x67   :  { %v596_v57 = vld [vmem:[%s1107_s8] ss:$0 sm:$0xff]  ;;  %p874_p12 = scmp.ne.s32.totalorder %s559_s12, %s873_s6  ;;  %p879_p0 = scmp.lt.s32.totalorder %s873_s6, %s873_s6 }
  0x68   :  { %648 = vmatpush3.bf16.msra.mxu0 %v734_v5  ;;  %668 = vmatpush3.bf16.msra.mxu1 %v742_v10 }
  0x69   :  { %649 = vmatprep.subr.bf16.mxu0 %v910_v0  ;;  %669 = vmatprep.subr.bf16.mxu1 %v910_v0  ;;  %p880_p1 = por %p879_p0, %p878_p13 }
  0x6b   :  { %p881_p2 = pnand %p880_p1, %p874_p12 }
  0x6c   :  { %650 = vmatpush3.bf16.msra.mxu0 %v735_v7  ;;  %670 = vmatpush3.bf16.msra.mxu1 %v743_v12 }
  0x6d   :  { %651 = vmatprep.subr.bf16.mxu0 %v910_v0  ;;  %671 = vmatprep.subr.bf16.mxu1 %v910_v0 }
  0x70   :  { %652 = vmatpush3.bf16.msra.mxu0 %v736_v9  ;;  %672 = vmatpush3.bf16.msra.mxu1 %v744_v14 }
  0x71   :  { %653 = vmatprep.subr.bf16.mxu0 %v910_v0  ;;  %673 = vmatprep.subr.bf16.mxu1 %v910_v0 }
  0x74   :  { %654 = vmatpush3.bf16.msra.mxu0 %v737_v11  ;;  %674 = vmatpush3.bf16.msra.mxu1 %v745_v16 }
  0x75   :  { %655 = vmatprep.subr.bf16.mxu0 %v910_v0  ;;  %675 = vmatprep.subr.bf16.mxu1 %v910_v0 }
  0x78   :  { %656 = vmatpush3.bf16.msra.mxu0 %v738_v13  ;;  %676 = vmatpush3.bf16.msra.mxu1 %v746_v17 }
  0x79   :  { %681 = vmatprep.subr.bf16.mxu0 %v910_v0  ;;  %701 = vmatprep.subr.bf16.mxu1 %v910_v0 }
  0x7b   :  { %658 = vmatmul.mubr.bf16.vlgmr.msra.gmra.mrb[0].mxu0 %v100_v15 }
  0x7c   :  { %697 = vmatprep.mubr.msk.bf16.mxu0 %vm911_vm0, %v910_v0  ;;  %682 = vmatpush3.bf16.msra.mxu0 %v747_v18 }
  0x7d   :  { %683 = vmatprep.subr.bf16.mxu0 %v910_v0 }
  0x80   :  { %684 = vmatpush3.bf16.msra.mxu0 %v748_v19 }
  0x81   :  { %685 = vmatprep.subr.bf16.mxu0 %v910_v0 }
  0x84   :  { %686 = vmatpush3.bf16.msra.mxu0 %v749_v20 }
  0x85   :  { %687 = vmatprep.subr.bf16.mxu0 %v910_v0 }
  0x88   :  { %688 = vmatpush3.bf16.msra.mxu0 %v750_v21 }
  0x89   :  { %689 = vmatprep.subr.bf16.mxu0 %v910_v0 }
  0x8c   :  { %690 = vmatpush3.bf16.msra.mxu0 %v751_v22 }
  0x8d   :  { %691 = vmatprep.subr.bf16.mxu0 %v910_v0 }
  0x90   :  { %692 = vmatpush3.bf16.msra.mxu0 %v752_v23 }
  0x91   :  { %693 = vmatprep.subr.bf16.mxu0 %v910_v0 }
  0x94   :  { %694 = vmatpush3.bf16.msra.mxu0 %v753_v24 }
  0x95   :  { %695 = vmatprep.subr.bf16.mxu0 %v910_v0 }
  0x98   :  { %696 = vmatpush3.bf16.msra.mxu0 %v754_v33 }
 0x14e   :  { %v206_v26 = vpop.f32.mrb[0].mxu0 }
 0x14f   :  { %v207_v27 = vadd.f32 %v569_v25, %v206_v26  ;;  %v659_v28 = vpop.f32.mrb[1].mxu0 }
 0x150   :  { %v209_v29 = vpop.f32.mrb[2].mxu0 }
 0x151   :  { %v212_v30 = vmax.f32 %v207_v27, 0.0  ;;  %v660_v31 = vpop.f32.mrb[3].mxu0 }
 0x153   :  { %v213_v32 = vpack.c.bf16 %v212_v30, %v212_v30 }
 0x155   :  { %678 = vmatmul.mubr.bf16.vlgmr.msra.gmra.mrb[0].mxu1 %v213_v32 }
 0x156   :  { %717 = vmatprep.mubr.msk.bf16.mxu1 %vm911_vm0, %v910_v0  ;;  %702 = vmatpush3.bf16.msra.mxu1 %v755_v34 }
 0x157   :  { %703 = vmatprep.subr.bf16.mxu1 %v910_v0 }
 0x15a   :  { %704 = vmatpush3.bf16.msra.mxu1 %v756_v35 }
 0x15b   :  { %705 = vmatprep.subr.bf16.mxu1 %v910_v0 }
 0x15e   :  { %706 = vmatpush3.bf16.msra.mxu1 %v757_v36 }
 0x15f   :  { %707 = vmatprep.subr.bf16.mxu1 %v910_v0 }
 0x162   :  { %708 = vmatpush3.bf16.msra.mxu1 %v758_v37 }
 0x163   :  { %709 = vmatprep.subr.bf16.mxu1 %v910_v0 }
 0x166   :  { %710 = vmatpush3.bf16.msra.mxu1 %v759_v38 }
 0x167   :  { %711 = vmatprep.subr.bf16.mxu1 %v910_v0 }
 0x16a   :  { %712 = vmatpush3.bf16.msra.mxu1 %v760_v39 }
 0x16b   :  { %713 = vmatprep.subr.bf16.mxu1 %v910_v0 }
 0x16e   :  { %714 = vmatpush3.bf16.msra.mxu1 %v761_v47 }
 0x16f   :  { %715 = vmatprep.subr.bf16.mxu1 %v910_v0 }
 0x172   :  { %716 = vmatpush3.bf16.msra.mxu1 %v762_v48 }
 0x228   :  { %v319_v41 = vpop.f32.mrb[0].mxu1 }
 0x229   :  { %v320_v42 = vadd.f32 %v578_v40, %v319_v41  ;;  %v679_v43 = vpop.f32.mrb[1].mxu1 }
 0x22a   :  { %v322_v44 = vpop.f32.mrb[2].mxu1 }
 0x22b   :  { %v325_v45 = vpack.c.bf16 %v320_v42, %v320_v42  ;;  %v680_v46 = vpop.f32.mrb[3].mxu1 }
 0x22d   :  { %698 = vmatmul.mubr.bf16.vlgmr.msra.gmra.mrb[4].mxu0 %v325_v45 }
 0x300   :  { %v431_v50 = vpop.f32.mrb[4].mxu0 }
 0x301   :  { %v432_v51 = vadd.f32 %v587_v49, %v431_v50  ;;  %v699_v52 = vpop.f32.mrb[5].mxu0 }
 0x302   :  { %v434_v53 = vpop.f32.mrb[6].mxu0 }
 0x303   :  { %v437_v54 = vmax.f32 %v432_v51, 0.0  ;;  %v700_v55 = vpop.f32.mrb[7].mxu0 }
 0x305   :  { %v438_v56 = vpack.c.bf16 %v437_v54, %v437_v54 }
 0x307   :  { %718 = vmatmul.mubr.bf16.vlgmr.msra.gmra.mrb[4].mxu1 %v438_v56 }
 0x3da   :  { %v544_v58 = vpop.f32.mrb[4].mxu1 }
 0x3db   :  { %v545_v59 = vadd.f32 %v596_v57, %v544_v58  ;;  %v719_v60 = vpop.f32.mrb[5].mxu1 }
 0x3dc   :  { %v547_v61 = vpop.f32.mrb[6].mxu1 }
 0x3dd   :  { %v550_v62 = vpack.c.bf16 %v545_v59, %v545_v59  ;;  %v720_v63 = vpop.f32.mrb[7].mxu1 }
 0x3df   :  { %551 = vst [vmem:[#allocation11] sm:$0xf] %v550_v62 }
 0x3e0   :  { %884 = shalt.err (!%p881_p2)
}
 0x3e1   :  { %s885_s8 = scalar_lea.hbm %s1108_s9, 64 }
 0x3e2   :  { %p886_p3 = scmp.ne.s32.totalorder %s1108_s9, %s885_s8  ;;  %p889_p4 = scmp.lt.u32.totalorder %s885_s8, %s1108_s9 }
 0x3e4   :  { %p891_p5 = pnand %p889_p4, %p886_p3 }
 0x3e6   :  { %894 = shalt.err (!%p891_p5)
}
 0x3e7   :  { %561 = dma.vmem_to_hbm [thread:$0]  %s559_s12, 64, %s1108_s9, [#allocation4]  }
 0x3e8   :  { %901 = dma.done.wait [#allocation4], 64  }
 0x3e9   :  { %902 = vsyncadd [#allocation4], 4294967232 }
 0x3ea   :  { %565 = vsyncpa [#allocation3], 1 }
 0x3eb   :  { %566 = vsyncpa [#allocation6], 1 }
 0x3ec   :  { %567 = vsyncpa [#allocation9], 1 }
 0x3ed   :  { %568 = vsyncpa [#allocation4], 1 }

// kernel: tpu_custom_call.1
= control target key start
LH: loop header
LB: loop body
LE: loop exit
PB: predicated region body
PF: predicated region fallthrough
CT: control target
= control target key end

     0   :  { %14 = vsyncpa [#allocation3], 0  ;;  %s1099_s0 = inlined_call_operand.hbm [shape: bf16[8,128], index: 0, kind: input, shape index: {}]   ;;  %s1100_s1 = inlined_call_operand.hbm [shape: bf16[128,128], index: 1, kind: input, shape index: {}]   ;;  %s1101_s2 = inlined_call_operand.vmem [shape: f32[1,128], index: 2, kind: input, shape index: {}]   ;;  %s1102_s3 = inlined_call_operand.hbm [shape: bf16[128,128], index: 3, kind: input, shape index: {}]   ;;  %s1103_s4 = inlined_call_operand.vmem [shape: f32[1,128], index: 4, kind: input, shape index: {}]   ;;  %s1104_s5 = inlined_call_operand.hbm [shape: bf16[128,128], index: 5, kind: input, shape index: {}]   ;;  %s1105_s6 = inlined_call_operand.vmem [shape: f32[1,128], index: 6, kind: input, shape index: {}]   ;;  %s1106_s7 = inlined_call_operand.hbm [shape: bf16[128,128], index: 7, kind: input, shape index: {}]   ;;  %s1107_s8 = inlined_call_operand.vmem [shape: f32[1,128], index: 8, kind: input, shape index: {}]   ;;  %s1108_s9 = inlined_call_operand.hbm [shape: bf16[8,128], index: 9, kind: output, shape index: {}]  }
   0x1   :  { %15 = vsyncpa [#allocation6], 0 }
   0x2   :  { %16 = vsyncpa [#allocation9], 0 }
   0x3   :  { %17 = vsyncpa [#allocation4], 0  ;;  %s903_s30 = smov [#allocation5]   ;;  %s763_s13 = scalar_lea.hbm %s1100_s1, 1024 }
   0x4   :  { %s33_s10 = sshll.u32 %s903_s30, 4  ;;  %p764_p0 = scmp.ne.s32.totalorder %s1100_s1, %s763_s13  ;;  %s34_s10 = int_to_ptr.vmem [resolvable:$true] %s33_s10 }
   0x5   :  { %p767_p1 = scmp.lt.u32.totalorder %s763_s13, %s1100_s1 }
   0x7   :  { %p769_p2 = pnand %p767_p1, %p764_p0 }
   0x9   :  { %772 = shalt.err (!%p769_p2)
}
   0xa   :  { %s773_s18 = scalar_lea.vmem %s34_s10, 1024  ;;  %p778_p4 = scmp.lt.s32.totalorder %s34_s10, %s34_s10 }
   0xb   :  { %p774_p3 = scmp.ne.s32.totalorder %s34_s10, %s773_s18  ;;  %p779_p5 = scmp.lt.s32.totalorder %s773_s18, %s773_s18 }
   0xd   :  { %p780_p6 = por %p779_p5, %p778_p4 }
   0xf   :  { %p781_p7 = pnand %p780_p6, %p774_p3 }
  0x11   :  { %784 = shalt.err (!%p781_p7)
}
  0x12   :  { %s904_s19 = smov 64   ;;  %s905_s20 = smov 4  }
  0x13   :  { %39 = dma.hbm_to_vmem [thread:$0]  %s1100_s1, 1024, %s34_s10, [#allocation6], %s904_s19, %s904_s19, %s905_s20  }
  0x14   :  { %s906_s23 = smov [#allocation8]   ;;  %s907_s25 = smov [#allocation2]  }
  0x15   :  { %s61_s24 = sshll.u32 %s906_s23, 4  ;;  %s24_s26 = sshll.u32 %s907_s25, 4  ;;  %s62_s24 = int_to_ptr.vmem [resolvable:$true] %s61_s24  ;;  %s25_s26 = int_to_ptr.vmem [resolvable:$true] %s24_s26 }
  0x16   :  { %s785_s29 = scalar_lea.hbm %s1104_s5, 1024 }
  0x17   :  { %p786_p8 = scmp.ne.s32.totalorder %s1104_s5, %s785_s29  ;;  %p789_p9 = scmp.lt.u32.totalorder %s785_s29, %s1104_s5 }
  0x19   :  { %p791_p10 = pnand %p789_p9, %p786_p8 }
  0x1b   :  { %794 = shalt.err (!%p791_p10)
}
  0x1c   :  { %s795_s1 = scalar_lea.vmem %s62_s24, 1024  ;;  %p800_p12 = scmp.lt.s32.totalorder %s62_s24, %s62_s24 }
  0x1d   :  { %p796_p11 = scmp.ne.s32.totalorder %s62_s24, %s795_s1  ;;  %p801_p13 = scmp.lt.s32.totalorder %s795_s1, %s795_s1 }
  0x1f   :  { %p802_p0 = por %p801_p13, %p800_p12 }
  0x21   :  { %p803_p1 = pnand %p802_p0, %p796_p11 }
  0x23   :  { %806 = shalt.err (!%p803_p1)
}
  0x24   :  { %67 = dma.hbm_to_vmem [thread:$0]  %s1104_s5, 1024, %s62_s24, [#allocation9], %s904_s19, %s904_s19, %s905_s20  }
  0x25   :  { %s807_s17 = scalar_lea.hbm %s1099_s0, 64 }
  0x26   :  { %p808_p2 = scmp.ne.s32.totalorder %s1099_s0, %s807_s17  ;;  %p811_p3 = scmp.lt.u32.totalorder %s807_s17, %s1099_s0 }
  0x28   :  { %p813_p4 = pnand %p811_p3, %p808_p2 }
  0x2a   :  { %816 = shalt.err (!%p813_p4)
}
  0x2b   :  { %s817_s25 = scalar_lea.vmem %s25_s26, 64  ;;  %p822_p6 = scmp.lt.s32.totalorder %s25_s26, %s25_s26 }
  0x2c   :  { %p818_p5 = scmp.ne.s32.totalorder %s25_s26, %s817_s25  ;;  %p823_p7 = scmp.lt.s32.totalorder %s817_s25, %s817_s25 }
  0x2e   :  { %p824_p8 = por %p823_p7, %p822_p6 }
  0x30   :  { %p825_p9 = pnand %p824_p8, %p818_p5 }
  0x32   :  { %828 = shalt.err (!%p825_p9)
}
  0x33   :  { %27 = dma.hbm_to_vmem [thread:$0]  %s1099_s0, 64, %s25_s26, [#allocation3]  }
  0x34   :  { %s908_s27 = smov [#allocation7]   ;;  %s909_s29 = smov [#allocation10]  }
  0x35   :  { %s47_s28 = sshll.u32 %s908_s27, 4  ;;  %s75_s30 = sshll.u32 %s909_s29, 4  ;;  %s48_s28 = int_to_ptr.vmem [resolvable:$true] %s47_s28  ;;  %s76_s30 = int_to_ptr.vmem [resolvable:$true] %s75_s30 }
  0x36   :  { %s829_s13 = scalar_lea.hbm %s1102_s3, 1024 }
  0x37   :  { %p830_p10 = scmp.ne.s32.totalorder %s1102_s3, %s829_s13  ;;  %p833_p11 = scmp.lt.u32.totalorder %s829_s13, %s1102_s3 }
  0x39   :  { %p835_p12 = pnand %p833_p11, %p830_p10 }
  0x3b   :  { %838 = shalt.err (!%p835_p12)
}
  0x3c   :  { %s839_s0 = scalar_lea.vmem %s48_s28, 1024  ;;  %p844_p0 = scmp.lt.s32.totalorder %s48_s28, %s48_s28 }
  0x3d   :  { %p840_p13 = scmp.ne.s32.totalorder %s48_s28, %s839_s0  ;;  %p845_p1 = scmp.lt.s32.totalorder %s839_s0, %s839_s0 }
  0x3f   :  { %p846_p2 = por %p845_p1, %p844_p0 }
  0x41   :  { %p847_p3 = pnand %p846_p2, %p840_p13 }
  0x43   :  { %850 = shalt.err (!%p847_p3)
}
  0x44   :  { %53 = dma.hbm_to_vmem [thread:$0]  %s1102_s3, 1024, %s48_s28, [#allocation6], %s904_s19, %s904_s19, %s905_s20  }
  0x45   :  { %s851_s21 = scalar_lea.hbm %s1106_s7, 1024 }
  0x46   :  { %p852_p4 = scmp.ne.s32.totalorder %s1106_s7, %s851_s21  ;;  %p855_p5 = scmp.lt.u32.totalorder %s851_s21, %s1106_s7 }
  0x48   :  { %p857_p6 = pnand %p855_p5, %p852_p4 }
  0x4a   :  { %860 = shalt.err (!%p857_p6)
}
  0x4b   :  { %s861_s24 = scalar_lea.vmem %s76_s30, 1024  ;;  %p866_p8 = scmp.lt.s32.totalorder %s76_s30, %s76_s30 }
  0x4c   :  { %p862_p7 = scmp.ne.s32.totalorder %s76_s30, %s861_s24  ;;  %p867_p9 = scmp.lt.s32.totalorder %s861_s24, %s861_s24 }
  0x4e   :  { %p868_p10 = por %p867_p9, %p866_p8 }
  0x50   :  { %p869_p11 = pnand %p868_p10, %p862_p7 }
  0x52   :  { %872 = shalt.err (!%p869_p11)
}
  0x53   :  { %81 = dma.hbm_to_vmem [thread:$0]  %s1106_s7, 1024, %s76_s30, [#allocation9], %s904_s19, %s904_s19, %s905_s20  }
  0x54   :  { %895 = dma.done.wait [#allocation3], 64  }
  0x55   :  { %896 = vsyncadd [#allocation3], 4294967232 }
  0x56   :  { %897 = dma.done.wait [#allocation6], 2048  }
  0x57   :  { %898 = vsyncadd [#allocation6], 4294965248 }
  0x58   :  { %899 = dma.done.wait [#allocation9], 2048  }
  0x59   :  { %900 = vsyncadd [#allocation9], 4294965248  ;;  %v910_v0 = vmov 0.0   ;;  %vm911_vm0 = vmmov 0   ;;  %v731_v1 = vld [vmem:[#allocation5] sm:$0xff]   ;;  %v732_v2 = vld [vmem:[#allocation5 + $0x8] sm:$0xff]  }
  0x5a   :  { %641 = vmatprep.subr.bf16.mxu0 %v910_v0  ;;  %657 = vmatprep.mubr.msk.bf16.mxu0 %vm911_vm0, %v910_v0  ;;  %v733_v3 = vld [vmem:[#allocation5 + $0x10] sm:$0xff]   ;;  %v739_v4 = vld [vmem:[#allocation7] sm:$0xff]   ;;  %v734_v5 = vld [vmem:[#allocation5 + $0x18] sm:$0xff]   ;;  %s912_s11 = smov [#allocation11]  }
  0x5b   :  { %661 = vmatprep.subr.bf16.mxu1 %v910_v0  ;;  %677 = vmatprep.mubr.msk.bf16.mxu1 %vm911_vm0, %v910_v0  ;;  %v740_v6 = vld [vmem:[#allocation7 + $0x8] sm:$0xff]   ;;  %v735_v7 = vld [vmem:[#allocation5 + $0x20] sm:$0xff]   ;;  %v741_v8 = vld [vmem:[#allocation7 + $0x10] sm:$0xff]   ;;  %s558_s12 = sshll.u32 %s912_s11, 4  ;;  %s559_s12 = int_to_ptr.vmem [resolvable:$true] %s558_s12 }
  0x5c   :  { %642 = vmatpush3.bf16.msra.mxu0 %v731_v1  ;;  %662 = vmatpush3.bf16.msra.mxu1 %v739_v4  ;;  %v736_v9 = vld [vmem:[#allocation5 + $0x28] sm:$0xff]   ;;  %v742_v10 = vld [vmem:[#allocation7 + $0x18] sm:$0xff]   ;;  %v737_v11 = vld [vmem:[#allocation5 + $0x30] sm:$0xff]   ;;  %p878_p13 = scmp.lt.s32.totalorder %s559_s12, %s559_s12 }
  0x5d   :  { %643 = vmatprep.subr.bf16.mxu0 %v910_v0  ;;  %663 = vmatprep.subr.bf16.mxu1 %v910_v0  ;;  %v743_v12 = vld [vmem:[#allocation7 + $0x20] sm:$0xff]   ;;  %v738_v13 = vld [vmem:[#allocation5 + $0x38] sm:$0xff]   ;;  %v744_v14 = vld [vmem:[#allocation7 + $0x28] sm:$0xff]  }
  0x5e   :  { %v100_v15 = vld [vmem:[#allocation2] sm:$0xf]  ;;  %v745_v16 = vld [vmem:[#allocation7 + $0x30] sm:$0xff]   ;;  %v747_v18 = vld [vmem:[#allocation8] sm:$0xff]  }
  0x5f   :  { %v746_v17 = vld [vmem:[#allocation7 + $0x38] sm:$0xff]   ;;  %v748_v19 = vld [vmem:[#allocation8 + $0x8] sm:$0xff]   ;;  %v749_v20 = vld [vmem:[#allocation8 + $0x10] sm:$0xff]  }
  0x60   :  { %644 = vmatpush3.bf16.msra.mxu0 %v732_v2  ;;  %664 = vmatpush3.bf16.msra.mxu1 %v740_v6  ;;  %v750_v21 = vld [vmem:[#allocation8 + $0x18] sm:$0xff]   ;;  %v751_v22 = vld [vmem:[#allocation8 + $0x20] sm:$0xff]   ;;  %v752_v23 = vld [vmem:[#allocation8 + $0x28] sm:$0xff]  }
  0x61   :  { %645 = vmatprep.subr.bf16.mxu0 %v910_v0  ;;  %665 = vmatprep.subr.bf16.mxu1 %v910_v0  ;;  %v753_v24 = vld [vmem:[#allocation8 + $0x30] sm:$0xff]   ;;  %v569_v25 = vld [vmem:[%s1101_s2] ss:$0 sm:$0xff]  ;;  %v755_v34 = vld [vmem:[#allocation10] sm:$0xff]  }
  0x62   :  { %v754_v33 = vld [vmem:[#allocation8 + $0x38] sm:$0xff]   ;;  %v756_v35 = vld [vmem:[#allocation10 + $0x8] sm:$0xff]   ;;  %v757_v36 = vld [vmem:[#allocation10 + $0x10] sm:$0xff]  }
  0x63   :  { %v758_v37 = vld [vmem:[#allocation10 + $0x18] sm:$0xff]   ;;  %v759_v38 = vld [vmem:[#allocation10 + $0x20] sm:$0xff]   ;;  %v760_v39 = vld [vmem:[#allocation10 + $0x28] sm:$0xff]  }
  0x64   :  { %646 = vmatpush3.bf16.msra.mxu0 %v733_v3  ;;  %666 = vmatpush3.bf16.msra.mxu1 %v741_v8  ;;  %v578_v40 = vld [vmem:[%s1103_s4] ss:$0 sm:$0xff]  ;;  %v761_v47 = vld [vmem:[#allocation10 + $0x30] sm:$0xff]  }
  0x65   :  { %647 = vmatprep.subr.bf16.mxu0 %v910_v0  ;;  %667 = vmatprep.subr.bf16.mxu1 %v910_v0  ;;  %v762_v48 = vld [vmem:[#allocation10 + $0x38] sm:$0xff]  }
  0x66   :  { %v587_v49 = vld [vmem:[%s1105_s6] ss:$0 sm:$0xff]  ;;  %s873_s6 = scalar_lea.vmem %s559_s12, 64 }
  0x67   :  { %v596_v57 = vld [vmem:[%s1107_s8] ss:$0 sm:$0xff]  ;;  %p874_p12 = scmp.ne.s32.totalorder %s559_s12, %s873_s6  ;;  %p879_p0 = scmp.lt.s32.totalorder %s873_s6, %s873_s6 }
  0x68   :  { %648 = vmatpush3.bf16.msra.mxu0 %v734_v5  ;;  %668 = vmatpush3.bf16.msra.mxu1 %v742_v10 }
  0x69   :  { %649 = vmatprep.subr.bf16.mxu0 %v910_v0  ;;  %669 = vmatprep.subr.bf16.mxu1 %v910_v0  ;;  %p880_p1 = por %p879_p0, %p878_p13 }
  0x6b   :  { %p881_p2 = pnand %p880_p1, %p874_p12 }
  0x6c   :  { %650 = vmatpush3.bf16.msra.mxu0 %v735_v7  ;;  %670 = vmatpush3.bf16.msra.mxu1 %v743_v12 }
  0x6d   :  { %651 = vmatprep.subr.bf16.mxu0 %v910_v0  ;;  %671 = vmatprep.subr.bf16.mxu1 %v910_v0 }
  0x70   :  { %652 = vmatpush3.bf16.msra.mxu0 %v736_v9  ;;  %672 = vmatpush3.bf16.msra.mxu1 %v744_v14 }
  0x71   :  { %653 = vmatprep.subr.bf16.mxu0 %v910_v0  ;;  %673 = vmatprep.subr.bf16.mxu1 %v910_v0 }
  0x74   :  { %654 = vmatpush3.bf16.msra.mxu0 %v737_v11  ;;  %674 = vmatpush3.bf16.msra.mxu1 %v745_v16 }
  0x75   :  { %655 = vmatprep.subr.bf16.mxu0 %v910_v0  ;;  %675 = vmatprep.subr.bf16.mxu1 %v910_v0 }
  0x78   :  { %656 = vmatpush3.bf16.msra.mxu0 %v738_v13  ;;  %676 = vmatpush3.bf16.msra.mxu1 %v746_v17 }
  0x79   :  { %681 = vmatprep.subr.bf16.mxu0 %v910_v0  ;;  %701 = vmatprep.subr.bf16.mxu1 %v910_v0 }
  0x7b   :  { %658 = vmatmul.mubr.bf16.vlgmr.msra.gmra.mrb[0].mxu0 %v100_v15 }
  0x7c   :  { %697 = vmatprep.mubr.msk.bf16.mxu0 %vm911_vm0, %v910_v0  ;;  %682 = vmatpush3.bf16.msra.mxu0 %v747_v18 }
  0x7d   :  { %683 = vmatprep.subr.bf16.mxu0 %v910_v0 }
  0x80   :  { %684 = vmatpush3.bf16.msra.mxu0 %v748_v19 }
  0x81   :  { %685 = vmatprep.subr.bf16.mxu0 %v910_v0 }
  0x84   :  { %686 = vmatpush3.bf16.msra.mxu0 %v749_v20 }
  0x85   :  { %687 = vmatprep.subr.bf16.mxu0 %v910_v0 }
  0x88   :  { %688 = vmatpush3.bf16.msra.mxu0 %v750_v21 }
  0x89   :  { %689 = vmatprep.subr.bf16.mxu0 %v910_v0 }
  0x8c   :  { %690 = vmatpush3.bf16.msra.mxu0 %v751_v22 }
  0x8d   :  { %691 = vmatprep.subr.bf16.mxu0 %v910_v0 }
  0x90   :  { %692 = vmatpush3.bf16.msra.mxu0 %v752_v23 }
  0x91   :  { %693 = vmatprep.subr.bf16.mxu0 %v910_v0 }
  0x94   :  { %694 = vmatpush3.bf16.msra.mxu0 %v753_v24 }
  0x95   :  { %695 = vmatprep.subr.bf16.mxu0 %v910_v0 }
  0x98   :  { %696 = vmatpush3.bf16.msra.mxu0 %v754_v33 }
 0x14e   :  { %v206_v26 = vpop.f32.mrb[0].mxu0 }
 0x14f   :  { %v207_v27 = vadd.f32 %v569_v25, %v206_v26  ;;  %v659_v28 = vpop.f32.mrb[1].mxu0 }
 0x150   :  { %v209_v29 = vpop.f32.mrb[2].mxu0 }
 0x151   :  { %v212_v30 = vmax.f32 %v207_v27, 0.0  ;;  %v660_v31 = vpop.f32.mrb[3].mxu0 }
 0x153   :  { %v213_v32 = vpack.c.bf16 %v212_v30, %v212_v30 }
 0x155   :  { %678 = vmatmul.mubr.bf16.vlgmr.msra.gmra.mrb[0].mxu1 %v213_v32 }
 0x156   :  { %717 = vmatprep.mubr.msk.bf16.mxu1 %vm911_vm0, %v910_v0  ;;  %702 = vmatpush3.bf16.msra.mxu1 %v755_v34 }
 0x157   :  { %703 = vmatprep.subr.bf16.mxu1 %v910_v0 }
 0x15a   :  { %704 = vmatpush3.bf16.msra.mxu1 %v756_v35 }
 0x15b   :  { %705 = vmatprep.subr.bf16.mxu1 %v910_v0 }
 0x15e   :  { %706 = vmatpush3.bf16.msra.mxu1 %v757_v36 }
 0x15f   :  { %707 = vmatprep.subr.bf16.mxu1 %v910_v0 }
 0x162   :  { %708 = vmatpush3.bf16.msra.mxu1 %v758_v37 }
 0x163   :  { %709 = vmatprep.subr.bf16.mxu1 %v910_v0 }
 0x166   :  { %710 = vmatpush3.bf16.msra.mxu1 %v759_v38 }
 0x167   :  { %711 = vmatprep.subr.bf16.mxu1 %v910_v0 }
 0x16a   :  { %712 = vmatpush3.bf16.msra.mxu1 %v760_v39 }
 0x16b   :  { %713 = vmatprep.subr.bf16.mxu1 %v910_v0 }
 0x16e   :  { %714 = vmatpush3.bf16.msra.mxu1 %v761_v47 }
 0x16f   :  { %715 = vmatprep.subr.bf16.mxu1 %v910_v0 }
 0x172   :  { %716 = vmatpush3.bf16.msra.mxu1 %v762_v48 }
 0x228   :  { %v319_v41 = vpop.f32.mrb[0].mxu1 }
 0x229   :  { %v320_v42 = vadd.f32 %v578_v40, %v319_v41  ;;  %v679_v43 = vpop.f32.mrb[1].mxu1 }
 0x22a   :  { %v322_v44 = vpop.f32.mrb[2].mxu1 }
 0x22b   :  { %v325_v45 = vpack.c.bf16 %v320_v42, %v320_v42  ;;  %v680_v46 = vpop.f32.mrb[3].mxu1 }
 0x22d   :  { %698 = vmatmul.mubr.bf16.vlgmr.msra.gmra.mrb[4].mxu0 %v325_v45 }
 0x300   :  { %v431_v50 = vpop.f32.mrb[4].mxu0 }
 0x301   :  { %v432_v51 = vadd.f32 %v587_v49, %v431_v50  ;;  %v699_v52 = vpop.f32.mrb[5].mxu0 }
 0x302   :  { %v434_v53 = vpop.f32.mrb[6].mxu0 }
 0x303   :  { %v437_v54 = vmax.f32 %v432_v51, 0.0  ;;  %v700_v55 = vpop.f32.mrb[7].mxu0 }
 0x305   :  { %v438_v56 = vpack.c.bf16 %v437_v54, %v437_v54 }
 0x307   :  { %718 = vmatmul.mubr.bf16.vlgmr.msra.gmra.mrb[4].mxu1 %v438_v56 }
 0x3da   :  { %v544_v58 = vpop.f32.mrb[4].mxu1 }
 0x3db   :  { %v545_v59 = vadd.f32 %v596_v57, %v544_v58  ;;  %v719_v60 = vpop.f32.mrb[5].mxu1 }
 0x3dc   :  { %v547_v61 = vpop.f32.mrb[6].mxu1 }
 0x3dd   :  { %v550_v62 = vpack.c.bf16 %v545_v59, %v545_v59  ;;  %v720_v63 = vpop.f32.mrb[7].mxu1 }
 0x3df   :  { %551 = vst [vmem:[#allocation11] sm:$0xf] %v550_v62 }
 0x3e0   :  { %884 = shalt.err (!%p881_p2)
}
 0x3e1   :  { %s885_s8 = scalar_lea.hbm %s1108_s9, 64 }
 0x3e2   :  { %p886_p3 = scmp.ne.s32.totalorder %s1108_s9, %s885_s8  ;;  %p889_p4 = scmp.lt.u32.totalorder %s885_s8, %s1108_s9 }
 0x3e4   :  { %p891_p5 = pnand %p889_p4, %p886_p3 }
 0x3e6   :  { %894 = shalt.err (!%p891_p5)
}
 0x3e7   :  { %561 = dma.vmem_to_hbm [thread:$0]  %s559_s12, 64, %s1108_s9, [#allocation4]  }
 0x3e8   :  { %901 = dma.done.wait [#allocation4], 64  }
 0x3e9   :  { %902 = vsyncadd [#allocation4], 4294967232 }
 0x3ea   :  { %565 = vsyncpa [#allocation3], 1 }
 0x3eb   :  { %566 = vsyncpa [#allocation6], 1 }
 0x3ec   :  { %567 = vsyncpa [#allocation9], 1 }
 0x3ed   :  { %568 = vsyncpa [#allocation4], 1 }

</bundles_post_ra>
